<compile_context>
chip_gen: v5e
topology: v5e:2x2
jax: 0.10.0
libtpu: 0.0.40
codegen_flags: <defaults>
</compile_context>

<pallas_src>
import numpy as np

import jax
import jax.numpy as jnp
from jax.experimental import pallas as pl
from jax.experimental.pallas import tpu as pltpu


def _make_kernel(H, W, Cs, n_layers):
    """Fused multi-layer conv3x3+ReLU kernel for one image (lane-dense layout)."""
    WCs = W * Cs

    def kernel(x_ref, w_ref, b_ref, o_ref, act_ref):
        # x_ref:   (1, H, W*Cs)              input image, channels padded to Cs
        # w_ref:   (L, 3, (W+2)*Cs, W*Cs)    banded per-row weight matrices
        # b_ref:   (L, 1, W*Cs)              lane-dense bias
        # o_ref:   (1, H, W*Cs)              output (channels padded to Cs)
        # act_ref: (H+2, (W+2)*Cs)           zero-padded activation scratch (VMEM)

        # padding=1: zero the border once, then write the interior.
        act_ref[...] = jnp.zeros_like(act_ref)
        act_ref[1:H + 1, Cs:Cs + WCs] = x_ref[0].astype(act_ref.dtype)

        for layer in range(n_layers):
            acc = jnp.zeros((H, WCs), jnp.float32)
            # One matmul per kernel row: LHS is a sublane-shifted (H, (W+2)*Cs)
            # slab of the padded activation, RHS folds dx taps + channels.
            for dy in range(3):
                acc = acc + jnp.dot(
                    act_ref[dy:dy + H, :],
                    w_ref[layer, dy],
                    preferred_element_type=jnp.float32,
                )
            y = jnp.maximum(acc + b_ref[layer], 0.0)   # bias + ReLU, lane-dense
            if layer + 1 < n_layers:
                # Next layer's input: interior of the padded scratch.
                act_ref[1:H + 1, Cs:Cs + WCs] = y.astype(act_ref.dtype)
            else:
                o_ref[0] = y.astype(o_ref.dtype)

    return kernel


def _build_banded_weights(w, b, W, Cs):
    """Turn a (3, 3, Cin, Cout) conv weight into per-row banded matrices.

    Returns:
      mat: (3, (W+2)*Cs, W*Cs) with mat[dy, p*Cs+ci, q*Cs+co] = w[dy, p-q, ci, co]
           for p-q in {0,1,2} (zero elsewhere and in channel-pad slots).
      bd:  (1, W*Cs) lane-dense bias (zero in channel-pad slots).
    """
    kh, kw, cin, cout = w.shape
    wp = jnp.zeros((kh, kw, Cs, Cs), w.dtype).at[:, :, :cin, :cout].set(w)
    # S[dx, p, q] = 1 iff p == q + dx  (output col q reads padded col q+dx).
    S = np.zeros((kw, W + 2, W), np.float32)
    for dx in range(kw):
        S[dx, np.arange(W) + dx, np.arange(W)] = 1.0
    mat = jnp.einsum("xpq,yxio->ypiqo", jnp.asarray(S, w.dtype), wp)
    mat = mat.reshape(kh, (W + 2) * Cs, W * Cs)
    bd = jnp.zeros((W, Cs), b.dtype).at[:, :cout].set(
        jnp.broadcast_to(b, (W, cout))
    ).reshape(1, W * Cs)
    return mat, bd


@jax.jit
def seq_conv_relu_nchw(x_nchw, params):
    """Forward pass of SeqConvRelu. Input/output are NCHW like PyTorch."""
    N, Cin, H, W = x_nchw.shape
    Cout = params[0][1].shape[0]
    L = len(params)
    Cs = max(Cin, Cout)          # per-pixel channel stride inside the kernel

    # NCHW -> lane-dense (N, H, W*Cs), channels zero-padded to Cs.
    x = jnp.transpose(x_nchw, (0, 2, 3, 1))
    x = jnp.pad(x, ((0, 0), (0, 0), (0, 0), (0, Cs - Cin)))
    x2d = x.reshape(N, H, W * Cs)

    mats, biases = [], []
    for (w, b) in params:
        m, bd = _build_banded_weights(w, b, W, Cs)
        mats.append(m)
        biases.append(bd)
    wmat = jnp.stack(mats)       # (L, 3, (W+2)*Cs, W*Cs)
    bvec = jnp.stack(biases)     # (L, 1, W*Cs)

    out2d = pl.pallas_call(
        _make_kernel(H, W, Cs, L),
        out_shape=jax.ShapeDtypeStruct((N, H, W * Cs), x_nchw.dtype),
        grid_spec=pltpu.PrefetchScalarGridSpec(
            num_scalar_prefetch=0,
            grid=(N,),
            in_specs=[
                pl.BlockSpec((1, H, W * Cs), lambda n: (n, 0, 0)),
                pl.BlockSpec((L, 3, (W + 2) * Cs, W * Cs),
                             lambda n: (0, 0, 0, 0)),
                pl.BlockSpec((L, 1, W * Cs), lambda n: (0, 0, 0)),
            ],
            out_specs=pl.BlockSpec((1, H, W * Cs), lambda n: (n, 0, 0)),
            scratch_shapes=[
                pltpu.VMEM((H + 2, (W + 2) * Cs), jnp.float32),
            ],
        ),
        compiler_params=pltpu.CompilerParams(
            dimension_semantics=("parallel",),
        ),
    )(x2d, wmat, bvec)

    out = out2d.reshape(N, H, W, Cs)[..., :Cout]   # drop channel padding
    return jnp.transpose(out, (0, 3, 1, 2))        # NHWC -> NCHW


def init_params(key, in_channels, out_channels, layers_count):
    """Deterministic parameter init mirroring the module's __init__ shapes."""
    params = []
    cin = in_channels
    for _ in range(layers_count):
        key, kw, kb = jax.random.split(key, 3)
        fan_in = cin * 3 * 3
        bound = float(1.0 / np.sqrt(fan_in))
        # Kept in (3, 3, Cin, Cout); a PyTorch (Cout, Cin, 3, 3) weight would
        # need transpose(2, 3, 1, 0) when loading.
        w = jax.random.uniform(kw, (3, 3, cin, out_channels), jnp.float32,
                               -bound, bound)
        b = jax.random.uniform(kb, (out_channels,), jnp.float32, -bound, bound)
        params.append((w, b))
        cin = out_channels
    return params


def _ref_forward(x_nchw, params):
    """Pure-JAX reference (lax conv) for a correctness sanity check."""
    y = x_nchw
    for w, b in params:
        wt = jnp.transpose(w, (3, 2, 0, 1))  # (Cout, Cin, 3, 3) = OIHW
        y = jax.lax.conv_general_dilated(
            y, wt, window_strides=(1, 1), padding="SAME",
            dimension_numbers=("NCHW", "OIHW", "NCHW"))
        y = jnp.maximum(y + b[None, :, None, None], 0.0)
    return y


if __name__ == "__main__":
    # Small shapes consistent with the module: batch=2, in_channels=4,
    # out_channels=8, spatial=16x16, layers_count=2.
    N, CIN, COUT, H, W = 2, 4, 8, 16, 16
    LAYERS = 2

    key = jax.random.PRNGKey(0)
    key, kx = jax.random.split(key)
    x = jax.random.normal(kx, (N, CIN, H, W), jnp.float32)
    params = tuple(init_params(key, CIN, COUT, LAYERS))

    out = jax.block_until_ready(seq_conv_relu_nchw(x, params))

    assert out.shape == (N, COUT, H, W), out.shape
    assert bool(jnp.all(out >= 0.0))                 # ReLU postcondition
    ref = _ref_forward(x, params)
    max_err = float(jnp.max(jnp.abs(out - ref)))
    assert max_err < 2e-2, max_err                   # MXU default-precision slack
    print("KERNEL_OK")
</pallas_src>

<mosaic_0001>
module attributes {stable_mosaic.version = 11 : i64} {
  func.func @kernel(%arg0: i32, %arg1: memref<1x16x128xf32, #tpu.memory_space<vmem>>, %arg2: memref<2x3x144x128xf32, #tpu.memory_space<vmem>>, %arg3: memref<2x1x128xf32, #tpu.memory_space<vmem>>, %arg4: memref<1x16x128xf32, #tpu.memory_space<vmem>>, %arg5: memref<18x144xf32, #tpu.memory_space<vmem>>) attributes {dimension_semantics = [#tpu.dimension_semantics<parallel>], iteration_bounds = array<i64: 2>, scalar_prefetch = 0 : i64, scratch_operands = 1 : i64, tpu.core_type = #tpu.core_type<tc>, window_params = [{transform_indices = @transform_0, window_bounds = array<i64: 1, 16, 128>}, {pipeline_mode = #tpu.pipeline_mode<synchronous>, transform_indices = @transform_1, window_bounds = array<i64: 2, 3, 144, 128>}, {pipeline_mode = #tpu.pipeline_mode<synchronous>, transform_indices = @transform_2, window_bounds = array<i64: 2, 1, 128>}, {transform_indices = @transform_3, window_bounds = array<i64: 1, 16, 128>}]} {
    %cst = arith.constant 0.000000e+00 : f32
    %0 = vector.broadcast %cst : f32 to vector<18x144xf32>
    %c0 = arith.constant 0 : index
    %c0_0 = arith.constant 0 : index
    %1 = vector.load %arg5[%c0, %c0_0] : memref<18x144xf32, #tpu.memory_space<vmem>>, vector<18x144xf32>
    tpu.vector_store %arg5[%c0, %c0_0], %0 {strides = array<i32>} : memref<18x144xf32, #tpu.memory_space<vmem>>, vector<18x144xf32>,
    %c0_1 = arith.constant 0 : index
    %c0_2 = arith.constant 0 : index
    %c0_3 = arith.constant 0 : index
    %2 = vector.load %arg1[%c0_1, %c0_2, %c0_3] : memref<1x16x128xf32, #tpu.memory_space<vmem>>, vector<1x16x128xf32>
    %3 = vector.shape_cast %2 : vector<1x16x128xf32> to vector<16x128xf32>
    %c1 = arith.constant 1 : index
    %c8 = arith.constant 8 : index
    %4 = vector.load %arg5[%c1, %c8] : memref<18x144xf32, #tpu.memory_space<vmem>>, vector<16x128xf32>
    tpu.vector_store %arg5[%c1, %c8], %3 {strides = array<i32>} : memref<18x144xf32, #tpu.memory_space<vmem>>, vector<16x128xf32>,
    %cst_4 = arith.constant 0.000000e+00 : f32
    %5 = vector.broadcast %cst_4 : f32 to vector<16x128xf32>
    %c0_5 = arith.constant 0 : index
    %c0_6 = arith.constant 0 : index
    %6 = vector.load %arg5[%c0_5, %c0_6] : memref<18x144xf32, #tpu.memory_space<vmem>>, vector<16x144xf32>
    %c0_7 = arith.constant 0 : index
    %c0_8 = arith.constant 0 : index
    %c0_9 = arith.constant 0 : index
    %c0_10 = arith.constant 0 : index
    %7 = vector.load %arg2[%c0_7, %c0_8, %c0_9, %c0_10] : memref<2x3x144x128xf32, #tpu.memory_space<vmem>>, vector<1x1x144x128xf32>
    %8 = vector.shape_cast %7 : vector<1x1x144x128xf32> to vector<144x128xf32>
    %cst_11 = arith.constant dense<0.000000e+00> : vector<16x128xf32>
    %9 = tpu.matmul %6, %8, %cst_11 {dimension_numbers = #tpu.dot_dimension_numbers<[1], [0], [0], [1], [0, 0, 1, 1], [], []>} : vector<16x144xf32>, vector<144x128xf32>, vector<16x128xf32> -> vector<16x128xf32>
    %10 = arith.addf %5, %9 : vector<16x128xf32>
    %c1_12 = arith.constant 1 : index
    %c0_13 = arith.constant 0 : index
    %11 = vector.load %arg5[%c1_12, %c0_13] : memref<18x144xf32, #tpu.memory_space<vmem>>, vector<16x144xf32>
    %c0_14 = arith.constant 0 : index
    %c1_15 = arith.constant 1 : index
    %c0_16 = arith.constant 0 : index
    %c0_17 = arith.constant 0 : index
    %12 = vector.load %arg2[%c0_14, %c1_15, %c0_16, %c0_17] : memref<2x3x144x128xf32, #tpu.memory_space<vmem>>, vector<1x1x144x128xf32>
    %13 = vector.shape_cast %12 : vector<1x1x144x128xf32> to vector<144x128xf32>
    %cst_18 = arith.constant dense<0.000000e+00> : vector<16x128xf32>
    %14 = tpu.matmul %11, %13, %cst_18 {dimension_numbers = #tpu.dot_dimension_numbers<[1], [0], [0], [1], [0, 0, 1, 1], [], []>} : vector<16x144xf32>, vector<144x128xf32>, vector<16x128xf32> -> vector<16x128xf32>
    %15 = arith.addf %10, %14 : vector<16x128xf32>
    %c2 = arith.constant 2 : index
    %c0_19 = arith.constant 0 : index
    %16 = vector.load %arg5[%c2, %c0_19] : memref<18x144xf32, #tpu.memory_space<vmem>>, vector<16x144xf32>
    %c0_20 = arith.constant 0 : index
    %c2_21 = arith.constant 2 : index
    %c0_22 = arith.constant 0 : index
    %c0_23 = arith.constant 0 : index
    %17 = vector.load %arg2[%c0_20, %c2_21, %c0_22, %c0_23] : memref<2x3x144x128xf32, #tpu.memory_space<vmem>>, vector<1x1x144x128xf32>
    %18 = vector.shape_cast %17 : vector<1x1x144x128xf32> to vector<144x128xf32>
    %cst_24 = arith.constant dense<0.000000e+00> : vector<16x128xf32>
    %19 = tpu.matmul %16, %18, %cst_24 {dimension_numbers = #tpu.dot_dimension_numbers<[1], [0], [0], [1], [0, 0, 1, 1], [], []>} : vector<16x144xf32>, vector<144x128xf32>, vector<16x128xf32> -> vector<16x128xf32>
    %20 = arith.addf %15, %19 : vector<16x128xf32>
    %c0_25 = arith.constant 0 : index
    %c0_26 = arith.constant 0 : index
    %c0_27 = arith.constant 0 : index
    %21 = vector.load %arg3[%c0_25, %c0_26, %c0_27] : memref<2x1x128xf32, #tpu.memory_space<vmem>>, vector<1x1x128xf32>
    %22 = vector.shape_cast %21 : vector<1x1x128xf32> to vector<1x128xf32>
    %23 = vector.broadcast %22 : vector<1x128xf32> to vector<16x128xf32>
    %24 = arith.addf %20, %23 : vector<16x128xf32>
    %cst_28 = arith.constant 0.000000e+00 : f32
    %25 = vector.broadcast %cst_28 : f32 to vector<16x128xf32>
    %26 = arith.maximumf %24, %25 : vector<16x128xf32>
    %c1_29 = arith.constant 1 : index
    %c8_30 = arith.constant 8 : index
    %27 = vector.load %arg5[%c1_29, %c8_30] : memref<18x144xf32, #tpu.memory_space<vmem>>, vector<16x128xf32>
    tpu.vector_store %arg5[%c1_29, %c8_30], %26 {strides = array<i32>} : memref<18x144xf32, #tpu.memory_space<vmem>>, vector<16x128xf32>,
    %cst_31 = arith.constant 0.000000e+00 : f32
    %28 = vector.broadcast %cst_31 : f32 to vector<16x128xf32>
    %c0_32 = arith.constant 0 : index
    %c0_33 = arith.constant 0 : index
    %29 = vector.load %arg5[%c0_32, %c0_33] : memref<18x144xf32, #tpu.memory_space<vmem>>, vector<16x144xf32>
    %c1_34 = arith.constant 1 : index
    %c0_35 = arith.constant 0 : index
    %c0_36 = arith.constant 0 : index
    %c0_37 = arith.constant 0 : index
    %30 = vector.load %arg2[%c1_34, %c0_35, %c0_36, %c0_37] : memref<2x3x144x128xf32, #tpu.memory_space<vmem>>, vector<1x1x144x128xf32>
    %31 = vector.shape_cast %30 : vector<1x1x144x128xf32> to vector<144x128xf32>
    %cst_38 = arith.constant dense<0.000000e+00> : vector<16x128xf32>
    %32 = tpu.matmul %29, %31, %cst_38 {dimension_numbers = #tpu.dot_dimension_numbers<[1], [0], [0], [1], [0, 0, 1, 1], [], []>} : vector<16x144xf32>, vector<144x128xf32>, vector<16x128xf32> -> vector<16x128xf32>
    %33 = arith.addf %28, %32 : vector<16x128xf32>
    %c1_39 = arith.constant 1 : index
    %c0_40 = arith.constant 0 : index
    %34 = vector.load %arg5[%c1_39, %c0_40] : memref<18x144xf32, #tpu.memory_space<vmem>>, vector<16x144xf32>
    %c1_41 = arith.constant 1 : index
    %c1_42 = arith.constant 1 : index
    %c0_43 = arith.constant 0 : index
    %c0_44 = arith.constant 0 : index
    %35 = vector.load %arg2[%c1_41, %c1_42, %c0_43, %c0_44] : memref<2x3x144x128xf32, #tpu.memory_space<vmem>>, vector<1x1x144x128xf32>
    %36 = vector.shape_cast %35 : vector<1x1x144x128xf32> to vector<144x128xf32>
    %cst_45 = arith.constant dense<0.000000e+00> : vector<16x128xf32>
    %37 = tpu.matmul %34, %36, %cst_45 {dimension_numbers = #tpu.dot_dimension_numbers<[1], [0], [0], [1], [0, 0, 1, 1], [], []>} : vector<16x144xf32>, vector<144x128xf32>, vector<16x128xf32> -> vector<16x128xf32>
    %38 = arith.addf %33, %37 : vector<16x128xf32>
    %c2_46 = arith.constant 2 : index
    %c0_47 = arith.constant 0 : index
    %39 = vector.load %arg5[%c2_46, %c0_47] : memref<18x144xf32, #tpu.memory_space<vmem>>, vector<16x144xf32>
    %c1_48 = arith.constant 1 : index
    %c2_49 = arith.constant 2 : index
    %c0_50 = arith.constant 0 : index
    %c0_51 = arith.constant 0 : index
    %40 = vector.load %arg2[%c1_48, %c2_49, %c0_50, %c0_51] : memref<2x3x144x128xf32, #tpu.memory_space<vmem>>, vector<1x1x144x128xf32>
    %41 = vector.shape_cast %40 : vector<1x1x144x128xf32> to vector<144x128xf32>
    %cst_52 = arith.constant dense<0.000000e+00> : vector<16x128xf32>
    %42 = tpu.matmul %39, %41, %cst_52 {dimension_numbers = #tpu.dot_dimension_numbers<[1], [0], [0], [1], [0, 0, 1, 1], [], []>} : vector<16x144xf32>, vector<144x128xf32>, vector<16x128xf32> -> vector<16x128xf32>
    %43 = arith.addf %38, %42 : vector<16x128xf32>
    %c1_53 = arith.constant 1 : index
    %c0_54 = arith.constant 0 : index
    %c0_55 = arith.constant 0 : index
    %44 = vector.load %arg3[%c1_53, %c0_54, %c0_55] : memref<2x1x128xf32, #tpu.memory_space<vmem>>, vector<1x1x128xf32>
    %45 = vector.shape_cast %44 : vector<1x1x128xf32> to vector<1x128xf32>
    %46 = vector.broadcast %45 : vector<1x128xf32> to vector<16x128xf32>
    %47 = arith.addf %43, %46 : vector<16x128xf32>
    %cst_56 = arith.constant 0.000000e+00 : f32
    %48 = vector.broadcast %cst_56 : f32 to vector<16x128xf32>
    %49 = arith.maximumf %47, %48 : vector<16x128xf32>
    %c0_57 = arith.constant 0 : index
    %c0_58 = arith.constant 0 : index
    %c0_59 = arith.constant 0 : index
    %50 = vector.load %arg4[%c0_57, %c0_58, %c0_59] : memref<1x16x128xf32, #tpu.memory_space<vmem>>, vector<1x16x128xf32>
    %51 = vector.shape_cast %50 : vector<1x16x128xf32> to vector<16x128xf32>
    %52 = vector.shape_cast %49 : vector<16x128xf32> to vector<1x16x128xf32>
    tpu.vector_store %arg4[%c0_57, %c0_58, %c0_59], %52 {strides = array<i32>} : memref<1x16x128xf32, #tpu.memory_space<vmem>>, vector<1x16x128xf32>,
    return
  }
  func.func @transform_0(%arg0: i32) -> (i32, i32, i32) {
    %c0_i32 = arith.constant 0 : i32
    %c0_i32_0 = arith.constant 0 : i32
    %c0_i32_1 = arith.constant 0 : i32
    return %arg0, %c0_i32, %c0_i32_0 : i32, i32, i32
  }
  func.func @transform_1(%arg0: i32) -> (i32, i32, i32, i32) {
    %c0_i32 = arith.constant 0 : i32
    %c0_i32_0 = arith.constant 0 : i32
    %c0_i32_1 = arith.constant 0 : i32
    %c0_i32_2 = arith.constant 0 : i32
    %c0_i32_3 = arith.constant 0 : i32
    return %c0_i32, %c0_i32_0, %c0_i32_1, %c0_i32_2 : i32, i32, i32, i32
  }
  func.func @transform_2(%arg0: i32) -> (i32, i32, i32) {
    %c0_i32 = arith.constant 0 : i32
    %c0_i32_0 = arith.constant 0 : i32
    %c0_i32_1 = arith.constant 0 : i32
    %c0_i32_2 = arith.constant 0 : i32
    return %c0_i32, %c0_i32_0, %c0_i32_1 : i32, i32, i32
  }
  func.func @transform_3(%arg0: i32) -> (i32, i32, i32) {
    %c0_i32 = arith.constant 0 : i32
    %c0_i32_0 = arith.constant 0 : i32
    %c0_i32_1 = arith.constant 0 : i32
    return %arg0, %c0_i32, %c0_i32_0 : i32, i32, i32
  }
}

</mosaic_0001>

<bundles_post_ra>
// kernel: seq_conv_relu_nchw.1
= control target key start
LH: loop header
LB: loop body
LE: loop exit
PB: predicated region body
PF: predicated region fallthrough
CT: control target
= control target key end

     0   :  { %s973_s12 = smov 0   ;;  %s1377_s0 = inlined_call_operand.vmem [shape: f32[2,16,128], index: 0, kind: input, shape index: {}]   ;;  %s1378_s1 = inlined_call_operand.vmem [shape: f32[2,3,144,128], index: 1, kind: input, shape index: {}]   ;;  %s1379_s2 = inlined_call_operand.vmem [shape: f32[2,1,128], index: 2, kind: input, shape index: {}]   ;;  %s1380_s3 = inlined_call_operand.vmem [shape: f32[2,16,128], index: 3, kind: output, shape index: {}]  }
   0x1 LB: > { %s815_s13 = sadd.s32 4294967295, %s949_s12   ;;  %p819_p0 = scmp.ge.s32.totalorder %s949_s12, 1  ;;  %s949_s12 = sphi %s973_s12, %s13_s12  }
   0x2   : > { %p137_p1 = scmp.lt.s32.totalorder %s949_s12, 3 }
   0x4   : > { %p138_p2 = pnand %p819_p0, %p137_p1 }
   0x5   : > { %p161_p3 = scmp.lt.s32.totalorder (!%p138_p2), %s815_s13, 1  ;;  %s952_s9 = smov (!%p138_p2), 8  }
   0x6   : > { %141 = sbr.rel (%p138_p2) target bundleno = 600 (0x258), region = 32 }
   0xb   : > { %v227_v0 = vld [vmem:[%s1378_s1 + $0x78] sm:$0xff]  ;;  %v226_v1 = vld [vmem:[%s1378_s1 + $0x70] sm:$0xff]  ;;  %vm172_vm0 = vcmask 130048   ;;  %s1382_s13 = smov (!%p161_p3, %s815_s13), 1  ;;  %v225_v2 = vld [vmem:[%s1378_s1 + $0x68] sm:$0xff]  ;;  %v951_v5 = vmov 0.0  }
   0xc   : > { %327 = vmatpush.msra.mxu2 %v227_v0  ;;  %v839_v3 = vld [vmem:[%s1378_s1 + $0x108] sm:$0xff]  ;;  %v838_v4 = vld [vmem:[%s1378_s1 + $0x100] sm:$0xff]  ;;  %171 = vst [vmem:[#allocation2] sm:$0xff] %v951_v5  ;;  %s929_s24 = sshll.u32 %s1382_s13, 4  ;;  %v837_v7 = vld [vmem:[%s1378_s1 + $0xf8] sm:$0xff]  ;;  %vm183_vm1 = vcmask 1040384  }
   0xd   : > { %276 = vmatpush.msra.mxu0 %v839_v3  ;;  %173 = vst.msk [vmem:[#allocation2 + $0x8] sm:$0xff] %vm172_vm0, %v951_v5  ;;  %v224_v6 = vld [vmem:[%s1378_s1 + $0x60] sm:$0xff]  ;;  %s165_s4 = scalar_lea.vmem %s1377_s0, %s929_s24  ;;  %v223_v12 = vld [vmem:[%s1378_s1 + $0x58] sm:$0xff]  ;;  %v836_v13 = vld [vmem:[%s1378_s1 + $0xf0] sm:$0xff]  ;;  %vm177_vm2 = vcmask 123904   ;;  %vm196_vm3 = vcmask 1047617   ;;  %s170_s29 = scalar_lea.vmem %s1380_s3, %s929_s24 }
   0xe   : > { %328 = vmatpush.msra.mxu2 %v226_v1  ;;  %174 = vst [vmem:[#allocation2 + $0x10] sm:$0xff] %v951_v5  ;;  %v179_v8 = vld [vmem:[%s165_s4] sm:$0xff]  ;;  %v180_v9 = vld [vmem:[%s165_s4 + $0x8] sm:$0xff]  ;;  %v222_v14 = vld [vmem:[%s1378_s1 + $0x50] sm:$0xff]  ;;  %vm198_vm4 = vcmask 64513   ;;  %vm204_vm5 = vcmask 1040448  }
   0xf   : > { %277 = vmatpush.msra.mxu0 %v838_v4  ;;  %175 = vst.msk [vmem:[#allocation2 + $0x18] sm:$0xff] %vm172_vm0, %v951_v5  ;;  %v184_v10 = vrot.slane %v179_v8, 7  ;;  %v185_v11 = vrot.slane %v180_v9, 7  ;;  %v835_v15 = vld [vmem:[%s1378_s1 + $0xe8] sm:$0xff]  ;;  %v834_v17 = vld [vmem:[%s1378_s1 + $0xe0] sm:$0xff]  ;;  %v219_v20 = vld [vmem:[%s1378_s1 + $0x38] sm:$0xff] }
  0x10   : > { %329 = vmatpush.msra.mxu2 %v225_v2  ;;  %176 = vst [vmem:[#allocation2 + $0x20] sm:$0x3] %v951_v5  ;;  %v221_v16 = vld [vmem:[%s1378_s1 + $0x48] sm:$0xff]  ;;  %v220_v18 = vld [vmem:[%s1378_s1 + $0x40] sm:$0xff]  ;;  %v218_v21 = vld [vmem:[%s1378_s1 + $0x30] sm:$0xff]  ;;  %vm206_vm6 = vcmask 57344  }
  0x11   : > { %278 = vmatpush.msra.mxu0 %v837_v7  ;;  %187 = vrot.lane.b32.xlu0 %v184_v10, %s952_s9  ;;  %v186_v19 = vsel %vm183_vm1, %v184_v10, %v185_v11  ;;  %v217_v22 = vld [vmem:[%s1378_s1 + $0x28] sm:$0xff]  ;;  %v216_v23 = vld [vmem:[%s1378_s1 + $0x20] sm:$0xff]  ;;  %v833_v24 = vld [vmem:[%s1378_s1 + $0xd8] sm:$0xff]  ;;  %178 = vst.msk [vmem:[#allocation2 + $0x28] sm:$0x3] %vm177_vm2, %v951_v5  ;;  %vm200_vm7 = vcmask 1047616  }
  0x12   : > { %330 = vmatpush.msra.mxu2 %v224_v6  ;;  %191 = vrot.lane.b32.xlu1 %v185_v11, %s952_s9  ;;  %v841_v25 = vld [vmem:[%s1378_s1 + $0x118] sm:$0xff]  ;;  %v832_v27 = vld [vmem:[%s1378_s1 + $0xd0] sm:$0xff]  ;;  %v831_v30 = vld [vmem:[%s1378_s1 + $0xc8] sm:$0xff]  ;;  %vm202_vm8 = vcmask 64512   ;;  %vm259_vm9 = vcmask 1046528   ;;  %vm400_vm10 = vcmask 1045504  }
  0x13   : > { %279 = vmatpush.msra.mxu0 %v836_v13  ;;  %v215_v26 = vld [vmem:[%s1378_s1 + $0x18] sm:$0xff]  ;;  %313 = vmatpush.msra.mxu1 %v841_v25  ;;  %v840_v28 = vld [vmem:[%s1378_s1 + $0x110] sm:$0xff]  ;;  %v213_v32 = vld [vmem:[%s1378_s1 + $0x8] sm:$0xff] }
  0x14   : > { %331 = vmatpush.msra.mxu2 %v223_v12  ;;  %v214_v29 = vld [vmem:[%s1378_s1 + $0x10] sm:$0xff]  ;;  %v861_v31 = vld [vmem:[%s1378_s1 + $0x198] sm:$0xff]  ;;  %v229_v33 = vld [vmem:[%s1378_s1 + $0x88] sm:$0xff] }
  0x15   : > { %280 = vmatpush.msra.mxu0 %v835_v15  ;;  %314 = vmatpush.msra.mxu1 %v840_v28  ;;  %v830_v34 = vld [vmem:[%s1378_s1 + $0xc0] sm:$0xff]  ;;  %v860_v35 = vld [vmem:[%s1378_s1 + $0x190] sm:$0xff]  ;;  %v829_v38 = vld [vmem:[%s1378_s1 + $0xb8] sm:$0xff] }
  0x16   : > { %332 = vmatpush.msra.mxu2 %v222_v14  ;;  %v212_v36 = vld [vmem:[%s1378_s1] sm:$0xff]  ;;  %364 = vmatpush.msra.mxu3 %v229_v33  ;;  %v859_v39 = vld [vmem:[%s1378_s1 + $0x188] sm:$0xff]  ;;  %v828_v40 = vld [vmem:[%s1378_s1 + $0xb0] sm:$0xff] }
  0x17   : > { %281 = vmatpush.msra.mxu0 %v834_v17  ;;  %417 = vmatpush.msrb.mxu1 %v861_v31  ;;  %v228_v37 = vld [vmem:[%s1378_s1 + $0x80] sm:$0xff]  ;;  %v827_v42 = vld [vmem:[%s1378_s1 + $0xa8] sm:$0xff]  ;;  %v857_v43 = vld [vmem:[%s1378_s1 + $0x178] sm:$0xff] }
  0x18   : > { %333 = vmatpush.msra.mxu2 %v221_v16  ;;  %365 = vmatpush.msra.mxu3 %v228_v37  ;;  %v858_v41 = vld [vmem:[%s1378_s1 + $0x180] sm:$0xff]  ;;  %v863_v44 = vld [vmem:[%s1378_s1 + $0x1a8] sm:$0xff]  ;;  %v856_v46 = vld [vmem:[%s1378_s1 + $0x170] sm:$0xff] }
  0x19   : > { %189 = vrot.lane.b32.xlu0 %v186_v19, %s952_s9  ;;  %282 = vmatpush.msra.mxu0 %v833_v24  ;;  %v826_v45 = vld [vmem:[%s1378_s1 + $0xa0] sm:$0xff]  ;;  %v825_v47 = vld [vmem:[%s1378_s1 + $0x98] sm:$0xff]  ;;  %v855_v48 = vld [vmem:[%s1378_s1 + $0x168] sm:$0xff] }
  0x1a   : > { %334 = vmatpush.msra.mxu2 %v220_v18  ;;  %418 = vmatpush.msrb.mxu1 %v860_v35  ;;  %v824_v49 = vld [vmem:[%s1378_s1 + $0x90] sm:$0xff]  ;;  %v854_v50 = vld [vmem:[%s1378_s1 + $0x160] sm:$0xff]  ;;  %v853_v51 = vld [vmem:[%s1378_s1 + $0x158] sm:$0xff] }
  0x1b   : > { %283 = vmatpush.msra.mxu0 %v832_v27  ;;  %454 = vmatpush.msrb.mxu3 %v863_v44  ;;  %v862_v52 = vld [vmem:[%s1378_s1 + $0x1a0] sm:$0xff]  ;;  %v852_v53 = vld [vmem:[%s1378_s1 + $0x150] sm:$0xff]  ;;  %v851_v54 = vld [vmem:[%s1378_s1 + $0x148] sm:$0xff] }
  0x1c   : > { %335 = vmatpush.msra.mxu2 %v219_v20  ;;  %419 = vmatpush.msrb.mxu1 %v859_v39  ;;  %v850_v55 = vld [vmem:[%s1378_s1 + $0x140] sm:$0xff]  ;;  %v849_v56 = vld [vmem:[%s1378_s1 + $0x138] sm:$0xff]  ;;  %v848_v57 = vld [vmem:[%s1378_s1 + $0x130] sm:$0xff] }
  0x1d   : > { %284 = vmatpush.msra.mxu0 %v831_v30  ;;  %455 = vmatpush.msrb.mxu3 %v862_v52  ;;  %v847_v58 = vld [vmem:[%s1378_s1 + $0x128] sm:$0xff]  ;;  %v846_v61 = vld [vmem:[%s1378_s1 + $0x120] sm:$0xff] }
  0x1e   : > { %336 = vmatpush.msra.mxu2 %v218_v21  ;;  %420 = vmatpush.msrb.mxu1 %v858_v41  ;;  %v880_v39 = vld [vmem:[%s1378_s1 + $0x220] sm:$0xff] }
  0x1f   : > { %285 = vmatpush.msra.mxu0 %v830_v34 }
  0x20   : > { %337 = vmatpush.msra.mxu2 %v217_v22  ;;  %421 = vmatpush.msrb.mxu1 %v857_v43  ;;  %v898_v43 = vld [vmem:[%s1378_s1 + $0x2b0] sm:$0xff] }
  0x21   : > { %286 = vmatpush.msra.mxu0 %v829_v38  ;;  %v881_v38 = vld [vmem:[%s1378_s1 + $0x228] sm:$0xff] }
  0x22   : > { %338 = vmatpush.msra.mxu2 %v216_v23  ;;  %422 = vmatpush.msrb.mxu1 %v856_v46  ;;  %v879_v46 = vld [vmem:[%s1378_s1 + $0x218] sm:$0xff] }
  0x23   : > { %287 = vmatpush.msra.mxu0 %v828_v40  ;;  %v899_v40 = vld [vmem:[%s1378_s1 + $0x2b8] sm:$0xff] }
  0x24   : > { %339 = vmatpush.msra.mxu2 %v215_v26  ;;  %423 = vmatpush.msrb.mxu1 %v855_v48  ;;  %v897_v48 = vld [vmem:[%s1378_s1 + $0x2a8] sm:$0xff] }
  0x25   : > { %288 = vmatpush.msra.mxu0 %v827_v42  ;;  %v921_v42 = vld [vmem:[%s1378_s1 + $0x348] sm:$0xff] }
  0x26   : > { %340 = vmatpush.msra.mxu2 %v214_v29  ;;  %424 = vmatpush.msrb.mxu1 %v854_v50 }
  0x27   : > { %289 = vmatpush.msra.mxu0 %v826_v45 }
  0x28   : > { %341 = vmatpush.msra.mxu2 %v213_v32  ;;  %425 = vmatpush.msrb.mxu1 %v853_v51  ;;  %v878_v51 = vld [vmem:[%s1378_s1 + $0x210] sm:$0xff] }
  0x29   : > { %290 = vmatpush.msra.mxu0 %v825_v47  ;;  %v920_v47 = vld [vmem:[%s1378_s1 + $0x340] sm:$0xff] }
  0x2a   : > { %342 = vmatpush.msra.mxu2 %v212_v36  ;;  %426 = vmatpush.msrb.mxu1 %v852_v53 }
  0x2b   : > { %291 = vmatpush.msra.mxu0 %v824_v49  ;;  %v919_v49 = vld [vmem:[%s1378_s1 + $0x338] sm:$0xff] }
  0x2c   : > { %427 = vmatpush.msrb.mxu1 %v851_v54  ;;  %612 = vmatpush.msrb.mxu2 %v881_v38  ;;  %v883_v38 = vld [vmem:[%s1378_s1 + $0x238] sm:$0xff] }
  0x2d   : > { %701 = vmatpush.msrb.mxu0 %v921_v42  ;;  %v866_v42 = vld [vmem:[%s1378_s1 + $0x1b0] sm:$0xff] }
  0x2e   : > { %428 = vmatpush.msrb.mxu1 %v850_v55  ;;  %613 = vmatpush.msrb.mxu2 %v880_v39  ;;  %v941_v55 = vld [vmem:[%s1379_s2] ss:$0 sm:$0xff]  ;;  %v886_v39 = vld [vmem:[%s1378_s1 + $0x250] sm:$0xff] }
  0x2f   : > { %702 = vmatpush.msrb.mxu0 %v920_v47  ;;  %v901_v47 = vld [vmem:[%s1378_s1 + $0x2c8] sm:$0xff] }
  0x30   : > { %429 = vmatpush.msrb.mxu1 %v849_v56  ;;  %614 = vmatpush.msrb.mxu2 %v879_v46  ;;  %v906_v46 = vld [vmem:[%s1378_s1 + $0x2d0] sm:$0xff] }
  0x31   : > { %703 = vmatpush.msrb.mxu0 %v919_v49  ;;  %v900_v49 = vld [vmem:[%s1378_s1 + $0x2c0] sm:$0xff] }
  0x32   : > { %430 = vmatpush.msrb.mxu1 %v848_v57  ;;  %615 = vmatpush.msrb.mxu2 %v878_v51  ;;  %v922_v51 = vld [vmem:[%s1378_s1 + $0x350] sm:$0xff] }
  0x34   : > { %431 = vmatpush.msrb.mxu1 %v847_v58 }
  0x36   : > { %432 = vmatpush.msrb.mxu1 %v846_v61 }
  0x83   : > { %v188_v59 = vpop.permute.xlu0 %187 }
  0x84   : > { %v192_v60 = vpop.permute.xlu1 %191  ;;  %197 = vst.msk [vmem:[#allocation2] sm:$0xfe] %vm196_vm3, %v188_v59 }
  0x85   : > { %199 = vst.msk [vmem:[#allocation2 + $0x8] sm:$0xfe] %vm198_vm4, %v188_v59 }
  0x86   : > { %205 = vst.msk [vmem:[#allocation2 + $0x20] sm:$0x1] %vm204_vm5, %v192_v60 }
  0x87   : > { %207 = vst.msk [vmem:[#allocation2 + $0x28] sm:$0x1] %vm206_vm6, %v192_v60 }
  0x8b   : > { %v190_v62 = vpop.permute.xlu0 %189  ;;  %v208_v63 = vld [vmem:[#allocation2] sm:$0xff] }
  0x8c   : > { %201 = vst.msk [vmem:[#allocation2 + $0x10] sm:$0xff] %vm200_vm7, %v190_v62  ;;  %343 = vmatmul.f32.vlgmr.msra.gmra.mxu2 %v208_v63  ;;  %v209_v0 = vld [vmem:[#allocation2 + $0x8] sm:$0xff]  ;;  %v230_v1 = vld [vmem:[#allocation2] sm:$0xfe] }
  0x8d   : > { %203 = vst.msk [vmem:[#allocation2 + $0x18] sm:$0xff] %vm202_vm8, %v190_v62  ;;  %844 = vmatmul.msk.f32.vlgmr.msra.gmra.mxu3 %vm172_vm0, %v209_v0  ;;  %v231_v2 = vld [vmem:[#allocation2 + $0x8] sm:$0xfe]  ;;  %v260_v5 = vrot.slane %v230_v1, 1  ;;  %v232_v12 = vld [vmem:[#allocation2 + $0x20] sm:$0x1] }
  0x8e   : > { %v263_v7 = vrot.slane %v231_v2, 1  ;;  %v374_v11 = vld [vmem:[#allocation2 + $0x8] sm:$0xfc]  ;;  %v233_v14 = vld [vmem:[#allocation2 + $0x28] sm:$0x1]  ;;  %v266_v16 = vrot.slane %v232_v12, 1  ;;  %561 = vmatpush.msra.mxu3 %v899_v40 }
  0x8f   : > { %v404_v15 = vrot.slane %v374_v11, 2  ;;  %v268_v17 = vrot.slane %v233_v14, 1  ;;  %v376_v19 = vld [vmem:[#allocation2 + $0x28] sm:$0x3]  ;;  %v373_v23 = vld [vmem:[#allocation2] sm:$0xfc] }
  0x90   : > { %v409_v22 = vrot.slane %v376_v19, 2  ;;  %v401_v26 = vrot.slane %v373_v23, 2  ;;  %v375_v28 = vld [vmem:[#allocation2 + $0x20] sm:$0x3]  ;;  %562 = vmatpush.msra.mxu3 %v898_v43  ;;  %v895_v11 = vld [vmem:[%s1378_s1 + $0x298] sm:$0xff]  ;;  %v917_v12 = vld [vmem:[%s1378_s1 + $0x328] sm:$0xff] }
  0x91   : > { %v407_v29 = vrot.slane %v375_v28, 2  ;;  %v894_v14 = vld [vmem:[%s1378_s1 + $0x290] sm:$0xff]  ;;  %v873_v19 = vld [vmem:[%s1378_s1 + $0x1e8] sm:$0xff]  ;;  %v891_v23 = vld [vmem:[%s1378_s1 + $0x278] sm:$0xff] }
  0x92   : > { %563 = vmatpush.msra.mxu3 %v897_v48  ;;  %v870_v28 = vld [vmem:[%s1378_s1 + $0x1d0] sm:$0xff]  ;;  %v908_v40 = vld [vmem:[%s1378_s1 + $0x2e0] sm:$0xff]  ;;  %v885_v43 = vld [vmem:[%s1378_s1 + $0x248] sm:$0xff] }
  0x93   : > { %v210_v3 = vld [vmem:[#allocation2 + $0x10] sm:$0xff] }
  0x94   : > { %346 = vmatmul.f32.gmra.mxu2 %v210_v3  ;;  %v211_v4 = vld [vmem:[#allocation2 + $0x18] sm:$0xff]  ;;  %v261_v6 = vrot.slane %v210_v3, 1  ;;  %v402_v24 = vrot.slane %v210_v3, 2 }
  0x95   : > { %845 = vmatmul.msk.f32.gmra.mxu3 %vm172_vm0, %v211_v4  ;;  %v264_v8 = vrot.slane %v211_v4, 1  ;;  %v405_v13 = vrot.slane %v211_v4, 2 }
  0x96   : > { %v262_v9 = vsel %vm259_vm9, %v260_v5, %v261_v6  ;;  %v267_v20 = vsel %vm259_vm9, %v261_v6, %v266_v16  ;;  %v403_v27 = vsel %vm400_vm10, %v401_v26, %v402_v24  ;;  %v408_v30 = vsel %vm400_vm10, %v402_v24, %v407_v29  ;;  %v874_v16 = vld [vmem:[%s1378_s1 + $0x1f0] sm:$0xff]  ;;  %v913_v24 = vld [vmem:[%s1378_s1 + $0x308] sm:$0xff] }
  0x97   : > { %292 = vmatmul.f32.vlgmr.msra.gmra.mxu0 %v262_v9  ;;  %v265_v10 = vsel %vm259_vm9, %v263_v7, %v264_v8  ;;  %v406_v18 = vsel %vm400_vm10, %v404_v15, %v405_v13  ;;  %v269_v21 = vsel %vm259_vm9, %v264_v8, %v268_v17  ;;  %v410_v25 = vsel %vm400_vm10, %v405_v13, %v409_v22  ;;  %v877_v7 = vld [vmem:[%s1378_s1 + $0x208] sm:$0xff]  ;;  %v896_v8 = vld [vmem:[%s1378_s1 + $0x2a0] sm:$0xff]  ;;  %v918_v9 = vld [vmem:[%s1378_s1 + $0x330] sm:$0xff] }
  0x98   : > { %842 = vmatmul.msk.f32.vlgmr.msra.gmra.mxu1 %vm172_vm0, %v265_v10  ;;  %616 = vmatpush.msrb.mxu2 %v877_v7  ;;  %v876_v10 = vld [vmem:[%s1378_s1 + $0x200] sm:$0xff]  ;;  %v875_v13 = vld [vmem:[%s1378_s1 + $0x1f8] sm:$0xff]  ;;  %v893_v17 = vld [vmem:[%s1378_s1 + $0x288] sm:$0xff] }
  0x99   : > { %564 = vmatpush.msra.mxu3 %v896_v8  ;;  %704 = vmatpush.msrb.mxu0 %v918_v9  ;;  %v916_v15 = vld [vmem:[%s1378_s1 + $0x320] sm:$0xff]  ;;  %v890_v26 = vld [vmem:[%s1378_s1 + $0x270] sm:$0xff]  ;;  %v889_v29 = vld [vmem:[%s1378_s1 + $0x268] sm:$0xff] }
  0x9a   : > { %617 = vmatpush.msrb.mxu2 %v876_v10  ;;  %v872_v22 = vld [vmem:[%s1378_s1 + $0x1e0] sm:$0xff]  ;;  %649 = vmatpush.msra.mxu1 %v883_v38 }
  0x9b   : > { %565 = vmatpush.msra.mxu3 %v895_v11  ;;  %705 = vmatpush.msrb.mxu0 %v917_v12 }
  0x9c   : > { %618 = vmatpush.msrb.mxu2 %v875_v13 }
  0x9d   : > { %864 = vmatmul.msk.f32.vlgmr.msrb.gmra.mxu3 %vm172_vm0, %v406_v18  ;;  %v915_v18 = vld [vmem:[%s1378_s1 + $0x318] sm:$0xff]  ;;  %706 = vmatpush.msrb.mxu0 %v916_v15 }
  0x9e   : > { %566 = vmatpush.msra.mxu3 %v894_v14  ;;  %619 = vmatpush.msrb.mxu2 %v874_v16 }
  0x9f   : > { %295 = vmatmul.f32.gmra.mxu0 %v267_v20  ;;  %v892_v20 = vld [vmem:[%s1378_s1 + $0x280] sm:$0xff] }
  0xa0   : > { %843 = vmatmul.msk.f32.gmra.mxu1 %vm172_vm0, %v269_v21  ;;  %567 = vmatpush.msra.mxu3 %v893_v17  ;;  %v914_v21 = vld [vmem:[%s1378_s1 + $0x310] sm:$0xff] }
  0xa1   : > { %707 = vmatpush.msrb.mxu0 %v915_v18  ;;  %620 = vmatpush.msrb.mxu2 %v873_v19 }
  0xa2   : > { %568 = vmatpush.msra.mxu3 %v892_v20 }
  0xa3   : > { %708 = vmatpush.msrb.mxu0 %v914_v21  ;;  %621 = vmatpush.msrb.mxu2 %v872_v22 }
  0xa4   : > { %569 = vmatpush.msra.mxu3 %v891_v23 }
  0xa5   : > { %865 = vmatmul.msk.f32.gmra.mxu3 %vm172_vm0, %v410_v25  ;;  %v871_v25 = vld [vmem:[%s1378_s1 + $0x1d8] sm:$0xff]  ;;  %709 = vmatpush.msrb.mxu0 %v913_v24 }
  0xa6   : > { %622 = vmatpush.msrb.mxu2 %v871_v25  ;;  %570 = vmatpush.msra.mxu3 %v890_v26 }
  0xa8   : > { %433 = vmatmul.f32.vlgmr.msrb.gmra.mxu1 %v403_v27  ;;  %v912_v27 = vld [vmem:[%s1378_s1 + $0x300] sm:$0xff]  ;;  %623 = vmatpush.msrb.mxu2 %v870_v28 }
  0xa9   : > { %710 = vmatpush.msrb.mxu0 %v912_v27  ;;  %571 = vmatpush.msra.mxu3 %v889_v29 }
  0xb0   : > { %436 = vmatmul.f32.gmra.mxu1 %v408_v30  ;;  %v911_v30 = vld [vmem:[%s1378_s1 + $0x2f8] sm:$0xff] }
  0xb1   : > { %711 = vmatpush.msrb.mxu0 %v911_v30 }
 0x10f   : > { %v344_v37 = vpop.f32.mrf.mxu2 }
 0x110   : > { %v367_v31 = vpop.f32.mrf.mxu3 }
 0x114   : > { %v293_v33 = vpop.f32.mrf.mxu0 }
 0x115   : > { %v316_v32 = vpop.f32.mrf.mxu1 }
 0x116   : > { %v317_v36 = vadd.f32 %v316_v32, %v293_v33  ;;  %v888_v32 = vld [vmem:[%s1378_s1 + $0x260] sm:$0xff]  ;;  %v910_v33 = vld [vmem:[%s1378_s1 + $0x2f0] sm:$0xff] }
 0x117   : > { %v347_v57 = vpop.f32.mrf.mxu2  ;;  %572 = vmatpush.msra.mxu3 %v888_v32  ;;  %712 = vmatpush.msrb.mxu0 %v910_v33 }
 0x118   : > { %v370_v34 = vpop.f32.mrf.mxu3  ;;  %v345_v41 = vadd.f32 %v344_v37, %v317_v36  ;;  %v909_v36 = vld [vmem:[%s1378_s1 + $0x2e8] sm:$0xff]  ;;  %v867_v37 = vld [vmem:[%s1378_s1 + $0x1b8] sm:$0xff] }
 0x119   : > { %713 = vmatpush.msrb.mxu0 %v909_v36 }
 0x11a   : > { %v368_v53 = vadd.f32 %v367_v31, %v345_v41  ;;  %v869_v31 = vld [vmem:[%s1378_s1 + $0x1c8] sm:$0xff]  ;;  %v882_v41 = vld [vmem:[%s1378_s1 + $0x230] sm:$0xff] }
 0x11b   : > { %624 = vmatpush.msrb.mxu2 %v869_v31  ;;  %650 = vmatpush.msra.mxu1 %v882_v41 }
 0x11c   : > { %v296_v44 = vpop.f32.mrf.mxu0  ;;  %714 = vmatpush.msrb.mxu0 %v908_v40 }
 0x11d   : > { %v319_v35 = vpop.f32.mrf.mxu1 }
 0x11e   : > { %v320_v52 = vadd.f32 %v319_v35, %v296_v44  ;;  %v887_v35 = vld [vmem:[%s1378_s1 + $0x258] sm:$0xff] }
 0x11f   : > { %573 = vmatpush.msra.mxu3 %v887_v35  ;;  %v907_v44 = vld [vmem:[%s1378_s1 + $0x2d8] sm:$0xff] }
 0x120   : > { %v457_v45 = vpop.f32.mrf.mxu3  ;;  %v348_v58 = vadd.f32 %v347_v57, %v320_v52  ;;  %715 = vmatpush.msrb.mxu0 %v907_v44 }
 0x121   : > { %574 = vmatpush.msra.mxu3 %v886_v39 }
 0x122   : > { %v371_v63 = vadd.f32 %v370_v34, %v348_v58  ;;  %v868_v34 = vld [vmem:[%s1378_s1 + $0x1c0] sm:$0xff]  ;;  %716 = vmatpush.msrb.mxu0 %v906_v46 }
 0x123   : > { %625 = vmatpush.msrb.mxu2 %v868_v34  ;;  %575 = vmatpush.msra.mxu3 %v885_v43  ;;  %v942_v34 = vld [vmem:[%s1379_s2 + $0x1] ss:$0 sm:$0xff] }
 0x125   : > { %v434_v50 = vpop.f32.mrf.mxu1  ;;  %626 = vmatpush.msrb.mxu2 %v867_v37 }
 0x126   : > { %v458_v54 = vadd.f32 %v457_v45, %v434_v50  ;;  %v884_v45 = vld [vmem:[%s1378_s1 + $0x240] sm:$0xff]  ;;  %v923_v50 = vld [vmem:[%s1378_s1 + $0x358] sm:$0xff] }
 0x127   : > { %627 = vmatpush.msrb.mxu2 %v866_v42  ;;  %576 = vmatpush.msra.mxu3 %v884_v45 }
 0x128   : > { %v463_v56 = vadd.f32 %v458_v54, %v368_v53  ;;  %v460_v61 = vpop.f32.mrf.mxu3  ;;  %738 = vmatpush.msrb.mxu1 %v923_v50 }
 0x129   : > { %598 = vmatpush.msrb.mxu3 %v901_v47 }
 0x12a   : > { %v469_v59 = vadd.f32 %v941_v55, %v463_v56  ;;  %739 = vmatpush.msrb.mxu1 %v922_v51 }
 0x12b   : > { %599 = vmatpush.msrb.mxu3 %v900_v49 }
 0x12c   : > { %v471_v60 = vmax.f32 %v469_v59, 0.0 }
 0x12d   : > { %v437_v62 = vpop.f32.mrf.mxu1 }
 0x12e   : > { %v461_v0 = vadd.f32 %v460_v61, %v437_v62  ;;  %v475_v1 = vrot.slane %v471_v60, 7 }
 0x130   : > { %v464_v2 = vadd.f32 %v461_v0, %v371_v63  ;;  %478 = vrot.lane.b32.xlu1 %v475_v1, %s952_s9 }
 0x132   : > { %v470_v3 = vadd.f32 %v941_v55, %v464_v2 }
 0x134   : > { %v472_v4 = vmax.f32 %v470_v3, 0.0 }
 0x136   : > { %v476_v5 = vrot.slane %v472_v4, 7 }
 0x138   : > { %v477_v6 = vsel %vm183_vm1, %v475_v1, %v476_v5 }
 0x139   : > { %480 = vrot.lane.b32.xlu2 %v477_v6, %s952_s9 }
 0x141   : > { %482 = vrot.lane.b32.xlu2 %v476_v5, %s952_s9 }
 0x193   : > { %v481_v48 = vpop.permute.xlu2 %480 }
 0x194   : > { %489 = vst.msk [vmem:[#allocation2 + $0x10] sm:$0xff] %vm200_vm7, %v481_v48 }
 0x195   : > { %490 = vst.msk [vmem:[#allocation2 + $0x18] sm:$0xff] %vm202_vm8, %v481_v48 }
 0x19b   : > { %v483_v52 = vpop.permute.xlu2 %482  ;;  %v495_v54 = vld [vmem:[#allocation2 + $0x10] sm:$0xff] }
 0x19c   : > { %491 = vst.msk [vmem:[#allocation2 + $0x20] sm:$0x1] %vm204_vm5, %v483_v52  ;;  %v546_v60 = vrot.slane %v495_v54, 1  ;;  %v686_v62 = vrot.slane %v495_v54, 2  ;;  %v496_v5 = vld [vmem:[#allocation2 + $0x18] sm:$0xff] }
 0x19d   : > { %492 = vst.msk [vmem:[#allocation2 + $0x28] sm:$0x1] %vm206_vm6, %v483_v52  ;;  %v689_v11 = vrot.slane %v496_v5, 2  ;;  %v549_v13 = vrot.slane %v496_v5, 1 }
 0x1a2   : > { %v479_v53 = vpop.permute.xlu1 %478 }
 0x1a3   : > { %487 = vst.msk [vmem:[#allocation2] sm:$0xfe] %vm196_vm3, %v479_v53  ;;  %v518_v1 = vld [vmem:[#allocation2 + $0x20] sm:$0x1] }
 0x1a4   : > { %488 = vst.msk [vmem:[#allocation2 + $0x8] sm:$0xfe] %vm198_vm4, %v479_v53  ;;  %v660_v2 = vld [vmem:[#allocation2 + $0x20] sm:$0x3]  ;;  %v551_v3 = vrot.slane %v518_v1, 1 }
 0x1a5   : > { %v691_v4 = vrot.slane %v660_v2, 2  ;;  %v661_v15 = vld [vmem:[#allocation2 + $0x28] sm:$0x3] }
 0x1a6   : > { %v552_v7 = vsel %vm259_vm9, %v546_v60, %v551_v3  ;;  %v519_v17 = vld [vmem:[#allocation2 + $0x28] sm:$0x1]  ;;  %v693_v18 = vrot.slane %v661_v15, 2 }
 0x1a7   : > { %v692_v8 = vsel %vm400_vm10, %v686_v62, %v691_v4  ;;  %v553_v19 = vrot.slane %v519_v17, 1 }
 0x1a8   : > { %v694_v20 = vsel %vm400_vm10, %v689_v11, %v693_v18 }
 0x1a9   : > { %v554_v21 = vsel %vm259_vm9, %v549_v13, %v553_v19 }
 0x1aa   : > { %v493_v55 = vld [vmem:[#allocation2] sm:$0xff] }
 0x1ab   : > { %v516_v56 = vld [vmem:[#allocation2] sm:$0xfe]  ;;  %628 = vmatmul.f32.vlgmr.msrb.gmra.mxu2 %v493_v55  ;;  %v494_v58 = vld [vmem:[#allocation2 + $0x8] sm:$0xff] }
 0x1ac   : > { %v658_v57 = vld [vmem:[#allocation2] sm:$0xfc]  ;;  %v545_v59 = vrot.slane %v516_v56, 1  ;;  %904 = vmatmul.msk.f32.vlgmr.msra.gmra.mxu1 %vm172_vm0, %v494_v58  ;;  %v659_v6 = vld [vmem:[#allocation2 + $0x8] sm:$0xfc] }
 0x1ad   : > { %v685_v61 = vrot.slane %v658_v57, 2  ;;  %v517_v9 = vld [vmem:[#allocation2 + $0x8] sm:$0xfe]  ;;  %v688_v10 = vrot.slane %v659_v6, 2 }
 0x1ae   : > { %v547_v63 = vsel %vm259_vm9, %v545_v59, %v546_v60  ;;  %v548_v12 = vrot.slane %v517_v9, 1 }
 0x1af   : > { %v687_v0 = vsel %vm400_vm10, %v685_v61, %v686_v62  ;;  %577 = vmatmul.f32.vlgmr.msra.gmra.mxu3 %v547_v63  ;;  %v690_v14 = vsel %vm400_vm10, %v688_v10, %v689_v11 }
 0x1b0   : > { %717 = vmatmul.f32.vlgmr.msrb.gmra.mxu0 %v687_v0  ;;  %v550_v16 = vsel %vm259_vm9, %v548_v12, %v549_v13 }
 0x1b3   : > { %631 = vmatmul.f32.gmra.mxu2 %v495_v54 }
 0x1b4   : > { %905 = vmatmul.msk.f32.gmra.mxu1 %vm172_vm0, %v496_v5 }
 0x1b7   : > { %580 = vmatmul.f32.gmra.mxu3 %v552_v7 }
 0x1b8   : > { %720 = vmatmul.f32.gmra.mxu0 %v692_v8 }
 0x1bc   : > { %924 = vmatmul.msk.f32.vlgmr.msrb.gmra.mxu1 %vm172_vm0, %v690_v14 }
 0x1bf   : > { %902 = vmatmul.msk.f32.vlgmr.msrb.gmra.mxu3 %vm172_vm0, %v550_v16 }
 0x1c4   : > { %925 = vmatmul.msk.f32.gmra.mxu1 %vm172_vm0, %v694_v20 }
 0x1c7   : > { %903 = vmatmul.msk.f32.gmra.mxu3 %vm172_vm0, %v554_v21 }
 0x229   : > { %v652_v22 = vpop.f32.mrf.mxu1 }
 0x22d   : > { %v718_v30 = vpop.f32.mrf.mxu0 }
 0x22e   : > { %v629_v26 = vpop.f32.mrf.mxu2 }
 0x231   : > { %v655_v24 = vpop.f32.mrf.mxu1 }
 0x232   : > { %v578_v23 = vpop.f32.mrf.mxu3 }
 0x235   : > { %v721_v43 = vpop.f32.mrf.mxu0 }
 0x236   : > { %v632_v39 = vpop.f32.mrf.mxu2 }
 0x239   : > { %v741_v27 = vpop.f32.mrf.mxu1 }
 0x23a   : > { %v581_v25 = vpop.f32.mrf.mxu3  ;;  %v742_v32 = vadd.f32 %v741_v27, %v718_v30 }
 0x241   : > { %v744_v40 = vpop.f32.mrf.mxu1 }
 0x242   : > { %v601_v28 = vpop.f32.mrf.mxu3  ;;  %v745_v44 = vadd.f32 %v744_v40, %v721_v43 }
 0x243   : > { %v602_v29 = vadd.f32 %v601_v28, %v578_v23 }
 0x245   : > { %v630_v31 = vadd.f32 %v629_v26, %v602_v29 }
 0x247   : > { %v653_v33 = vadd.f32 %v652_v22, %v630_v31 }
 0x249   : > { %v747_v35 = vadd.f32 %v742_v32, %v653_v33 }
 0x24a   : > { %v604_v36 = vpop.f32.mrf.mxu3 }
 0x24b   : > { %v754_v37 = vadd.f32 %v942_v34, %v747_v35  ;;  %v605_v38 = vadd.f32 %v604_v36, %v581_v25 }
 0x24d   : > { %v756_v41 = vmax.f32 %v754_v37, 0.0  ;;  %v633_v42 = vadd.f32 %v632_v39, %v605_v38 }
 0x24f   : > { %758 = vst [vmem:[%s170_s29] sm:$0xff] %v756_v41  ;;  %v656_v45 = vadd.f32 %v655_v24, %v633_v42 }
 0x251   : > { %v748_v46 = vadd.f32 %v745_v44, %v656_v45 }
 0x253   : > { %v755_v47 = vadd.f32 %v942_v34, %v748_v46 }
 0x255   : > { %v757_v48 = vmax.f32 %v755_v47, 0.0 }
 0x257   : > { %759 = vst [vmem:[%s170_s29 + $0x8] sm:$0xff] %v757_v48 }
 0x258 PF: > { %s13_s12 = sadd.s32 1, %s949_s12  }
 0x259   : > { %p10_p4 = scmp.ge.s32.totalorder %s13_s12, 4  }
 0x25b   :  { %12 = sbr.rel (!%p10_p4) target bundleno = 1 (0x1), region = 68 }

</bundles_post_ra>
